<compile_context>
chip_gen: v5e
topology: v5e:2x2
jax: 0.10.0
libtpu: 0.0.40
codegen_flags: <defaults>
</compile_context>

<pallas_src>
import functools
import math

import jax
import jax.numpy as jnp
from jax import lax
from jax.experimental import pallas as pl
from jax.experimental.pallas import tpu as pltpu


def _round_up(x, m):
    return (x + m - 1) // m * m


def _pad2(a, rows, cols):
    return jnp.pad(a, ((0, rows - a.shape[0]), (0, cols - a.shape[1])))


# ---------------------------------------------------------------------------
# Kernel 1: hoisted feature transform   support = x @ W      (bf16 in/out,
# f32 MXU accumulation).  Runs once per layer over the node dimension.
# ---------------------------------------------------------------------------
def _xw_kernel(x_ref, w_ref, out_ref):
    out_ref[...] = jnp.dot(
        x_ref[...], w_ref[...], preferred_element_type=jnp.float32
    ).astype(out_ref.dtype)


def _feature_transform(x, w, *, tm):
    mp, fin = x.shape
    fout = w.shape[1]
    grid = (mp // tm,)

    flops = 2.0 * mp * fin * fout
    bytes_acc = (x.size * x.dtype.itemsize
                 + w.size * w.dtype.itemsize
                 + mp * fout * 2)  # bf16 output

    return pl.pallas_call(
        _xw_kernel,
        out_shape=jax.ShapeDtypeStruct((mp, fout), jnp.bfloat16),
        grid_spec=pltpu.PrefetchScalarGridSpec(
            num_scalar_prefetch=0,
            grid=grid,
            in_specs=[
                pl.BlockSpec((tm, fin), lambda i: (i, 0)),     # x tile (streamed)
                pl.BlockSpec((fin, fout), lambda i: (0, 0)),   # W (VMEM-resident)
            ],
            out_specs=pl.BlockSpec((tm, fout), lambda i: (i, 0)),
        ),
        compiler_params=pltpu.CompilerParams(
            dimension_semantics=("parallel",),
            vmem_limit_bytes=32 * 1024 * 1024,
        ),
        cost_estimate=pl.CostEstimate(
            flops=int(flops), transcendentals=0, bytes_accessed=int(bytes_acc)),
    )(x, w)


# ---------------------------------------------------------------------------
# Kernel 2: adjacency aggregation   act(adj @ support + b)
# Grid (row_tiles, adj_col_tiles); adj is the only streamed operand.
# ---------------------------------------------------------------------------
def _gcn_agg_kernel(adj_ref, sup_ref, b_ref, out_ref, acc_ref, *,
                    activation, n_valid, tk):
    k = pl.program_id(1)

    @pl.when(k == 0)
    def _():
        acc_ref[...] = jnp.zeros_like(acc_ref)

    # Slice the VMEM-resident support (constant index_map -> no re-DMA per i).
    start = pl.multiple_of(k * tk, tk)
    sup = sup_ref[pl.ds(start, tk), :]
    # acc += adj_ik @ support_k   (bf16 MXU inputs, f32 accumulation)
    acc_ref[...] += jnp.dot(adj_ref[...], sup,
                            preferred_element_type=jnp.float32)

    @pl.when(k == pl.num_programs(1) - 1)
    def _():
        h = acc_ref[...] + b_ref[...]          # bias added once, in f32
        if activation == "relu":
            out_ref[...] = jnp.maximum(h, 0.0).astype(out_ref.dtype)
        else:  # log_softmax over the first n_valid (real) class columns
            col = lax.broadcasted_iota(jnp.int32, h.shape, 1)
            h = jnp.where(col < n_valid, h, -1e30)
            m = jnp.max(h, axis=1, keepdims=True)
            shifted = h - m
            lse = jnp.log(jnp.sum(jnp.exp(shifted), axis=1, keepdims=True))
            out_ref[...] = (shifted - lse).astype(out_ref.dtype)


def _gcn_agg_layer(adj, support, b, *, activation, n_valid, out_dtype, tm, tk):
    mp, kp = adj.shape                 # padded node counts (multiples of tm/tk)
    fout = support.shape[1]            # output feature width (multiple of 128)
    grid = (mp // tm, kp // tk)

    flops = 2.0 * mp * kp * fout       # adj matmul only (X@W is hoisted out)
    bytes_acc = (adj.size * adj.dtype.itemsize
                 + support.size * support.dtype.itemsize
                 + b.size * b.dtype.itemsize
                 + mp * fout * jnp.dtype(out_dtype).itemsize)
    transc = mp * fout if activation != "relu" else 0

    kernel = functools.partial(_gcn_agg_kernel, activation=activation,
                               n_valid=n_valid, tk=tk)
    return pl.pallas_call(
        kernel,
        out_shape=jax.ShapeDtypeStruct((mp, fout), out_dtype),
        grid_spec=pltpu.PrefetchScalarGridSpec(
            num_scalar_prefetch=0,
            grid=grid,
            in_specs=[
                pl.BlockSpec((tm, tk), lambda i, k: (i, k)),    # adj (streamed)
                pl.BlockSpec((kp, fout), lambda i, k: (0, 0)),  # support (resident)
                pl.BlockSpec((1, fout), lambda i, k: (0, 0)),   # bias (resident)
            ],
            out_specs=pl.BlockSpec((tm, fout), lambda i, k: (i, 0)),
            scratch_shapes=[pltpu.VMEM((tm, fout), jnp.float32)],
        ),
        compiler_params=pltpu.CompilerParams(
            dimension_semantics=("parallel", "arbitrary"),
            # Fits v5e/v6e/v7x scoped budgets; for very large graphs the
            # resident support must be re-budgeted (v7x has only 64 MiB VMEM).
            vmem_limit_bytes=32 * 1024 * 1024,
        ),
        cost_estimate=pl.CostEstimate(
            flops=int(flops),
            transcendentals=int(transc),
            bytes_accessed=int(bytes_acc)),
    )(adj, support, b)


def gcn_forward(x, adj, w1, b1, w2, b2, *, tm=256, tk=512):
    n, nfeat = x.shape
    nhid = w1.shape[1]
    nout = w2.shape[1]

    n_p = _round_up(n, math.lcm(tm, tk))   # pad nodes so both axes tile evenly
    nhid_p = _round_up(nhid, 128)          # lane-dense hidden dim
    nout_p = _round_up(nout, 128)          # lane-dense class dim

    # bf16 MXU inputs (halves adj DMA traffic, doubles MXU rate); biases in f32.
    # TODO(synk): adj could be int8-quantized (v5e/v6e) or fp8 (v7x) with a
    # per-row scale applied in the finalize for ~2x less adj DMA on large graphs.
    adj_p = _pad2(adj, n_p, n_p).astype(jnp.bfloat16)
    x_p = _pad2(x, n_p, nfeat).astype(jnp.bfloat16)
    w1_p = _pad2(w1, nfeat, nhid_p).astype(jnp.bfloat16)
    b1_p = _pad2(b1.reshape(1, -1), 1, nhid_p).astype(jnp.float32)
    w2_p = _pad2(w2, nhid_p, nout_p).astype(jnp.bfloat16)
    b2_p = _pad2(b2.reshape(1, -1), 1, nout_p).astype(jnp.float32)

    # Layer 1: relu(adj @ (x @ W1) + b1), hoisted support, h1 kept bf16.
    sup1 = _feature_transform(x_p, w1_p, tm=tm)
    h1 = _gcn_agg_layer(adj_p, sup1, b1_p, activation="relu",
                        n_valid=nhid, out_dtype=jnp.bfloat16, tm=tm, tk=tk)

    # TODO(synk): training-mode dropout would use pltpu.prng_seed/prng_random_bits;
    # eval-mode dropout is the identity and is reproduced here.

    # Layer 2: log_softmax(adj @ (h1 @ W2) + b2) over the real classes.
    sup2 = _feature_transform(h1, w2_p, tm=tm)
    out = _gcn_agg_layer(adj_p, sup2, b2_p, activation="log_softmax",
                         n_valid=nout, out_dtype=jnp.float32, tm=tm, tk=tk)

    # TODO(synk): block-sparse adj skipping (per-row-tile nonzero block lists via
    # PrefetchScalarGridSpec + data-dependent index_map) would cut adj DMA by
    # 10-100x on realistically sparse graphs; dense streaming is used here.
    return out[:n, :nout]


def init_gcn_params(key, nfeat, nhid, nout):
    """uniform(-stdv, stdv) with stdv = 1/sqrt(fan_out), like reset_parameters()."""
    k1, k2, k3, k4 = jax.random.split(key, 4)
    stdv1 = 1.0 / jnp.sqrt(nhid)
    stdv2 = 1.0 / jnp.sqrt(nout)
    w1 = jax.random.uniform(k1, (nfeat, nhid), jnp.float32, -stdv1, stdv1)
    b1 = jax.random.uniform(k2, (1, nhid), jnp.float32, -stdv1, stdv1)
    w2 = jax.random.uniform(k3, (nhid, nout), jnp.float32, -stdv2, stdv2)
    b2 = jax.random.uniform(k4, (1, nout), jnp.float32, -stdv2, stdv2)
    return w1, b1, w2, b2


def gcn_reference(x, adj, w1, b1, w2, b2):
    h1 = jnp.maximum(adj @ (x @ w1) + b1, 0.0)
    h2 = adj @ (h1 @ w2) + b2
    return jax.nn.log_softmax(h2, axis=1)


if __name__ == "__main__":
    # 512 nodes -> padded to 512; agg grid (2, 1) with tm=256, tk=512, so the
    # row axis still has >=2 tiles for v7x's two TensorCores.
    N, NFEAT, NHID, NOUT = 512, 16, 32, 8
    DROPOUT = 0.5  # unused at eval time

    key = jax.random.PRNGKey(0)
    kx, kadj, kp = jax.random.split(key, 3)

    x = jax.random.normal(kx, (N, NFEAT), jnp.float32)

    # Symmetric adjacency with self loops, row-normalized.
    a = (jax.random.uniform(kadj, (N, N)) > 0.6).astype(jnp.float32)
    a = jnp.maximum(a, a.T) + jnp.eye(N, dtype=jnp.float32)
    a = a / jnp.sum(a, axis=1, keepdims=True)

    w1, b1, w2, b2 = init_gcn_params(kp, NFEAT, NHID, NOUT)

    out = gcn_forward(x, a, w1, b1, w2, b2, tm=256, tk=512)
    out = jax.block_until_ready(out)

    ref = gcn_reference(x, a, w1, b1, w2, b2)
    assert out.shape == (N, NOUT)
    # bf16 MXU inputs with f32 accumulation vs pure-f32 reference.
    assert jnp.allclose(out, ref, atol=2e-2, rtol=2e-2), "mismatch vs reference"

    print("KERNEL_OK")
</pallas_src>

<mosaic_0001>
module attributes {stable_mosaic.version = 11 : i64} {
  func.func @_xw_kernel(%arg0: i32, %arg1: memref<256x16xbf16, #tpu.memory_space<vmem>>, %arg2: memref<16x128xbf16, #tpu.memory_space<vmem>>, %arg3: memref<256x128xbf16, #tpu.memory_space<vmem>>) attributes {dimension_semantics = [#tpu.dimension_semantics<parallel>], iteration_bounds = array<i64: 2>, scalar_prefetch = 0 : i64, scratch_operands = 0 : i64, tpu.core_type = #tpu.core_type<tc>, window_params = [{transform_indices = @transform_0, window_bounds = array<i64: 256, 16>}, {pipeline_mode = #tpu.pipeline_mode<synchronous>, transform_indices = @transform_1, window_bounds = array<i64: 16, 128>}, {transform_indices = @transform_2, window_bounds = array<i64: 256, 128>}]} {
    %c0 = arith.constant 0 : index
    %c0_0 = arith.constant 0 : index
    %0 = vector.load %arg1[%c0, %c0_0] : memref<256x16xbf16, #tpu.memory_space<vmem>>, vector<256x16xbf16>
    %c0_1 = arith.constant 0 : index
    %c0_2 = arith.constant 0 : index
    %1 = vector.load %arg2[%c0_1, %c0_2] : memref<16x128xbf16, #tpu.memory_space<vmem>>, vector<16x128xbf16>
    %cst = arith.constant dense<0.000000e+00> : vector<256x128xf32>
    %2 = tpu.matmul %0, %1, %cst {dimension_numbers = #tpu.dot_dimension_numbers<[1], [0], [0], [1], [0, 0, 1, 1], [], []>} : vector<256x16xbf16>, vector<16x128xbf16>, vector<256x128xf32> -> vector<256x128xf32>
    %3 = arith.truncf %2 : vector<256x128xf32> to vector<256x128xbf16>
    %c0_3 = arith.constant 0 : index
    %c0_4 = arith.constant 0 : index
    %4 = vector.load %arg3[%c0_3, %c0_4] : memref<256x128xbf16, #tpu.memory_space<vmem>>, vector<256x128xbf16>
    tpu.vector_store %arg3[%c0_3, %c0_4], %3 {strides = array<i32>} : memref<256x128xbf16, #tpu.memory_space<vmem>>, vector<256x128xbf16>,
    return
  }
  func.func @transform_0(%arg0: i32) -> (i32, i32) {
    %c0_i32 = arith.constant 0 : i32
    %c0_i32_0 = arith.constant 0 : i32
    return %arg0, %c0_i32 : i32, i32
  }
  func.func @transform_1(%arg0: i32) -> (i32, i32) {
    %c0_i32 = arith.constant 0 : i32
    %c0_i32_0 = arith.constant 0 : i32
    %c0_i32_1 = arith.constant 0 : i32
    return %c0_i32, %c0_i32_0 : i32, i32
  }
  func.func @transform_2(%arg0: i32) -> (i32, i32) {
    %c0_i32 = arith.constant 0 : i32
    %c0_i32_0 = arith.constant 0 : i32
    return %arg0, %c0_i32 : i32, i32
  }
}

</mosaic_0001>

<bundles_post_ra>
// kernel: tpu_custom_call.1
= control target key start
LH: loop header
LB: loop body
LE: loop exit
PB: predicated region body
PF: predicated region fallthrough
CT: control target
= control target key end

     0   :  { %7 = vsyncpa [#allocation3], 0  ;;  %s1006_s0 = inlined_call_operand.vmem [shape: bf16[512,16], index: 0, kind: input, shape index: {}]   ;;  %s1007_s1 = inlined_call_operand.vmem [shape: bf16[16,128], index: 1, kind: input, shape index: {}]   ;;  %s1008_s2 = inlined_call_operand.hbm [shape: bf16[512,128], index: 2, kind: output, shape index: {}]  }
   0x1   :  { %9 = vsyncpa [#allocation3 + $0x1], 0  ;;  %s880_s9 = smov 0   ;;  %s882_s10 = smov 0  }
   0x2   :  { %s884_s11 = smov 0   ;;  %s886_s12 = smov 0  }
   0x3 LB: > { %s901_s13 = sadd.s32 4294967295, %s861_s12   ;;  %s546_s14 = sadd.s32 4294967294, %s861_s12   ;;  %s861_s12 = sphi %s886_s12, %s1014_s12   ;;  %s857_s11 = sphi %s884_s11, %s1013_s11   ;;  %s853_s10 = sphi %s882_s10, %s1012_s10   ;;  %s849_s9 = sphi %s880_s9, %s1011_s9  }
   0x4   : > { %s905_s15 = sadd.s32 1, %s861_s12   ;;  %s69_s16 = sadd.s32 1, %s857_s11 }
   0x5   : > { %s66_s17 = ssub.s32 %s861_s12, %s905_s15  ;;  %p79_p0 = scmp.ne.s32.totalorder %s857_s11, %s853_s10 }
   0x6   : > { %p67_p1 = scmp.eq.s32.totalorder %s66_s17, 0  ;;  %p80_p2 = scmp.eq.s32.totalorder %s901_s13, 1 }
   0x7   : > { %p85_p3 = scmp.ne.s32.totalorder %s853_s10, %s849_s9  ;;  %p86_p4 = scmp.eq.s32.totalorder %s546_s14, 1 }
   0x8   : > { %s916_s18 = scalar_select %p67_p1, %s857_s11, %s69_s16  }
   0x9   : > { %p918_p5 = por %p80_p2, %p79_p0  ;;  %p922_p6 = por %p86_p4, %p85_p3 }
   0xa   : > { %p549_p7 = scmp.ge.s32.totalorder %s861_s12, 1  ;;  %p116_p8 = scmp.lt.s32.totalorder %s861_s12, 3 }
   0xc   : > { %p117_p9 = pnand %p549_p7, %p116_p8 }
   0xd   : > { %s551_s23 = sshll.u32 (!%p117_p9), %s901_s13, 5  ;;  %s135_s28 = sand.u32 (!%p117_p9), 1, %s853_s10  }
   0xe   : > { %120 = sbr.rel (%p117_p9) target bundleno = 220 (0xdc), region = 28  ;;  %p139_p10 = scmp.lt.s32.totalorder (!%p117_p9), %s551_s23, 63 }
   0xf   : > { %s550_s29 = sshll.u32 (!%p117_p9), %s135_s28, 7  ;;  %s659_s3 = sshll.u32 (!%p117_p9), %s901_s13, 7 }
  0x10   : > { %s954_s30 = scalar_lea.vmem (!%p117_p9), [#allocation2], %s550_s29  ;;  %s480_s6 = scalar_lea.hbm (!%p117_p9), %s1008_s2, %s659_s3 }
  0x11   : > { %s481_s7 = sshll.u32 (!%p117_p9), %s954_s30, 4  ;;  %s483_s8 = sshll.u32 (!%p117_p9), %s480_s6, 4  ;;  %s482_s7 = int_to_ptr.vmem [resolvable:$true] %s481_s7  ;;  %s484_s8 = int_to_ptr.hbm [resolvable:$true] %s483_s8 }
  0x12   : > { %s469_s13 = scalar_lea.sflag (!%p117_p9), [#allocation3], %s135_s28  ;;  %s813_s14 = sshra.s32 (!%p117_p9), %s484_s8, 4  ;;  %s814_s14 = int_to_ptr.hbm [resolvable:$true] %s813_s14 }
  0x13   : > { %v658_v0 = vld [vmem:[%s1007_s1] sm:$0xff]  ;;  %s1016_s23 = smov (!%p139_p10, %s551_s23), 63  ;;  %vm266_vm0 = vcmask 130048   ;;  %s815_s16 = scalar_lea.hbm %s814_s14, 128 }
  0x14   : > { %322 = vmatpush.bf16.msra.mxu0 %v658_v0  ;;  %755 = vmatpush.bf16.msra.mxu1 %v658_v0  ;;  %s552_s24 = sshll.u32 %s1016_s23, 2  ;;  %p816_p11 = scmp.ne.s32.totalorder %s814_s14, %s815_s16 }
  0x15   : > { %756 = vmatpush.bf16.msra.mxu2 %v658_v0  ;;  %757 = vmatpush.bf16.msra.mxu3 %v658_v0  ;;  %s142_s27 = scalar_lea.vmem %s1006_s0, %s552_s24  ;;  %s819_s22 = scalar_lea.hbm %s1008_s2, 256 }
  0x16   : > { %v642_v1 = vld [vmem:[%s142_s27] sm:$0xff]  ;;  %v643_v5 = vld [vmem:[%s142_s27 + $0x8] sm:$0xff]  ;;  %v644_v9 = vld [vmem:[%s142_s27 + $0x10] sm:$0xff]  ;;  %p817_p12 = pnand %p816_p11, %p918_p5  ;;  %p820_p0 = scmp.lt.s32.totalorder %s814_s14, %s1008_s2 }
  0x17   : > { %v646_v2 = vld [vmem:[%s142_s27 + $0x20] sm:$0xff]  ;;  %621 = vmatmul.msk.bf16.vlgmr.msra.gmra.mxu0 %vm266_vm0, %v642_v1  ;;  %v647_v6 = vld [vmem:[%s142_s27 + $0x28] sm:$0xff]  ;;  %v648_v10 = vld [vmem:[%s142_s27 + $0x30] sm:$0xff]  ;;  %p821_p1 = scmp.lt.s32.totalorder %s819_s22, %s815_s16 }
  0x18   : > { %v650_v3 = vld [vmem:[%s142_s27 + $0x40] sm:$0xff]  ;;  %625 = vmatmul.msk.bf16.vlgmr.msra.gmra.mxu1 %vm266_vm0, %v646_v2  ;;  %v651_v7 = vld [vmem:[%s142_s27 + $0x48] sm:$0xff]  ;;  %v652_v11 = vld [vmem:[%s142_s27 + $0x50] sm:$0xff]  ;;  %p818_p13 = pneg %p817_p12 }
  0x19   : > { %v654_v4 = vld [vmem:[%s142_s27 + $0x60] sm:$0xff]  ;;  %629 = vmatmul.msk.bf16.vlgmr.msra.gmra.mxu2 %vm266_vm0, %v650_v3  ;;  %v655_v8 = vld [vmem:[%s142_s27 + $0x68] sm:$0xff]  ;;  %v656_v12 = vld [vmem:[%s142_s27 + $0x70] sm:$0xff]  ;;  %p822_p2 = por %p821_p1, %p820_p0 }
  0x1a   : > { %633 = vmatmul.msk.bf16.vlgmr.msra.gmra.mxu3 %vm266_vm0, %v654_v4  ;;  %v645_v13 = vld [vmem:[%s142_s27 + $0x18] sm:$0xff] }
  0x1b   : > { %v649_v14 = vld [vmem:[%s142_s27 + $0x38] sm:$0xff]  ;;  %p823_p3 = pnand %p822_p2, %p818_p13 }
  0x1c   : > { %v653_v15 = vld [vmem:[%s142_s27 + $0x58] sm:$0xff] }
  0x1d   : > { %v657_v16 = vld [vmem:[%s142_s27 + $0x78] sm:$0xff] }
  0x27   : > { %622 = vmatmul.msk.bf16.gmra.mxu0 %vm266_vm0, %v643_v5 }
  0x28   : > { %626 = vmatmul.msk.bf16.gmra.mxu1 %vm266_vm0, %v647_v6 }
  0x29   : > { %630 = vmatmul.msk.bf16.gmra.mxu2 %vm266_vm0, %v651_v7 }
  0x2a   : > { %634 = vmatmul.msk.bf16.gmra.mxu3 %vm266_vm0, %v655_v8 }
  0x37   : > { %623 = vmatmul.msk.bf16.gmra.mxu0 %vm266_vm0, %v644_v9 }
  0x38   : > { %627 = vmatmul.msk.bf16.gmra.mxu1 %vm266_vm0, %v648_v10 }
  0x39   : > { %631 = vmatmul.msk.bf16.gmra.mxu2 %vm266_vm0, %v652_v11 }
  0x3a   : > { %635 = vmatmul.msk.bf16.gmra.mxu3 %vm266_vm0, %v656_v12 }
  0x47   : > { %624 = vmatmul.msk.bf16.gmra.mxu0 %vm266_vm0, %v645_v13 }
  0x48   : > { %628 = vmatmul.msk.bf16.gmra.mxu1 %vm266_vm0, %v649_v14 }
  0x49   : > { %632 = vmatmul.msk.bf16.gmra.mxu2 %vm266_vm0, %v653_v15 }
  0x4a   : > { %636 = vmatmul.msk.bf16.gmra.mxu3 %vm266_vm0, %v657_v16 }
  0x94   : > { %v324_v17 = vpop.f32.mrf.mxu0 }
  0x95   : > { %v344_v18 = vpop.f32.mrf.mxu1 }
  0x9c   : > { %v364_v19 = vpop.f32.mrf.mxu2  ;;  %v326_v21 = vpop.f32.mrf.mxu0 }
  0x9d   : > { %v384_v20 = vpop.f32.mrf.mxu3  ;;  %v346_v22 = vpop.f32.mrf.mxu1  ;;  %v663_v23 = vpack.c.bf16 %v326_v21, %v324_v17 }
  0x9e   : > { %v683_v24 = vpack.c.bf16 %v346_v22, %v344_v18 }
  0x9f   : > { %664 = vst [vmem:[%s954_s30] sm:$0xff] %v663_v23  }
  0xa0   : > { %743 = vst [vmem:[%s954_s30 + $0x20] sm:$0xff] %v683_v24  }
  0xa4   : > { %v366_v25 = vpop.f32.mrf.mxu2  ;;  %v329_v29 = vpop.f32.mrf.mxu0 }
  0xa5   : > { %v386_v26 = vpop.f32.mrf.mxu3  ;;  %v703_v27 = vpack.c.bf16 %v366_v25, %v364_v19  ;;  %v349_v30 = vpop.f32.mrf.mxu1 }
  0xa6   : > { %v723_v28 = vpack.c.bf16 %v386_v26, %v384_v20 }
  0xa7   : > { %747 = vst [vmem:[%s954_s30 + $0x40] sm:$0xff] %v703_v27  }
  0xa8   : > { %751 = vst [vmem:[%s954_s30 + $0x60] sm:$0xff] %v723_v28  }
  0xac   : > { %v369_v31 = vpop.f32.mrf.mxu2  ;;  %v331_v33 = vpop.f32.mrf.mxu0 }
  0xad   : > { %v389_v32 = vpop.f32.mrf.mxu3  ;;  %v351_v34 = vpop.f32.mrf.mxu1  ;;  %v668_v35 = vpack.c.bf16 %v331_v33, %v329_v29 }
  0xae   : > { %v688_v36 = vpack.c.bf16 %v351_v34, %v349_v30 }
  0xaf   : > { %740 = vst [vmem:[%s954_s30 + $0x8] sm:$0xff] %v668_v35  }
  0xb0   : > { %744 = vst [vmem:[%s954_s30 + $0x28] sm:$0xff] %v688_v36  }
  0xb4   : > { %v371_v37 = vpop.f32.mrf.mxu2  ;;  %v334_v41 = vpop.f32.mrf.mxu0 }
  0xb5   : > { %v391_v38 = vpop.f32.mrf.mxu3  ;;  %v708_v39 = vpack.c.bf16 %v371_v37, %v369_v31  ;;  %v354_v42 = vpop.f32.mrf.mxu1 }
  0xb6   : > { %v728_v40 = vpack.c.bf16 %v391_v38, %v389_v32 }
  0xb7   : > { %748 = vst [vmem:[%s954_s30 + $0x48] sm:$0xff] %v708_v39  }
  0xb8   : > { %752 = vst [vmem:[%s954_s30 + $0x68] sm:$0xff] %v728_v40  }
  0xbc   : > { %v374_v43 = vpop.f32.mrf.mxu2  ;;  %v336_v45 = vpop.f32.mrf.mxu0 }
  0xbd   : > { %v394_v44 = vpop.f32.mrf.mxu3  ;;  %v356_v46 = vpop.f32.mrf.mxu1  ;;  %v673_v47 = vpack.c.bf16 %v336_v45, %v334_v41 }
  0xbe   : > { %v693_v48 = vpack.c.bf16 %v356_v46, %v354_v42 }
  0xbf   : > { %741 = vst [vmem:[%s954_s30 + $0x10] sm:$0xff] %v673_v47  }
  0xc0   : > { %745 = vst [vmem:[%s954_s30 + $0x30] sm:$0xff] %v693_v48  }
  0xc4   : > { %v376_v49 = vpop.f32.mrf.mxu2  ;;  %v339_v53 = vpop.f32.mrf.mxu0 }
  0xc5   : > { %v396_v50 = vpop.f32.mrf.mxu3  ;;  %v713_v51 = vpack.c.bf16 %v376_v49, %v374_v43  ;;  %v359_v54 = vpop.f32.mrf.mxu1 }
  0xc6   : > { %v733_v52 = vpack.c.bf16 %v396_v50, %v394_v44 }
  0xc7   : > { %749 = vst [vmem:[%s954_s30 + $0x50] sm:$0xff] %v713_v51  }
  0xc8   : > { %753 = vst [vmem:[%s954_s30 + $0x70] sm:$0xff] %v733_v52  }
  0xcc   : > { %v379_v55 = vpop.f32.mrf.mxu2  ;;  %v341_v57 = vpop.f32.mrf.mxu0 }
  0xcd   : > { %v399_v56 = vpop.f32.mrf.mxu3  ;;  %v361_v58 = vpop.f32.mrf.mxu1  ;;  %v678_v59 = vpack.c.bf16 %v341_v57, %v339_v53 }
  0xce   : > { %v698_v60 = vpack.c.bf16 %v361_v58, %v359_v54 }
  0xcf   : > { %742 = vst [vmem:[%s954_s30 + $0x18] sm:$0xff] %v678_v59  }
  0xd0   : > { %746 = vst [vmem:[%s954_s30 + $0x38] sm:$0xff] %v698_v60  }
  0xd4   : > { %v381_v61 = vpop.f32.mrf.mxu2 }
  0xd5   : > { %v401_v62 = vpop.f32.mrf.mxu3  ;;  %v718_v63 = vpack.c.bf16 %v381_v61, %v379_v55 }
  0xd6   : > { %v738_v0 = vpack.c.bf16 %v401_v62, %v399_v56 }
  0xd7   : > { %750 = vst [vmem:[%s954_s30 + $0x58] sm:$0xff] %v718_v63  }
  0xd8   : > { %754 = vst [vmem:[%s954_s30 + $0x78] sm:$0xff] %v738_v0  }
  0xd9   : > { %826 = shalt.err (!%p823_p3)
}
  0xda   : > { %s863_s25 = smov 64   ;;  %s864_s26 = smov 4  }
  0xdb   : > { %758 = dma.vmem_to_hbm [thread:$0]  (%p918_p5), %s482_s7, 2048, %s484_s8, %s469_s13, %s863_s25, %s863_s25, %s864_s26  }
  0xdc PF: > { %p764_p4 = scmp.ge.s32.totalorder %s861_s12, 2  ;;  %s498_s27 = sand.u32 1, %s849_s9  }
  0xdd   : > { %s499_s28 = scalar_lea.sflag [#allocation3], %s498_s27 }
  0xde   : > { %p761_p7 = pnand %p764_p4, %p922_p6 }
  0xe0   : > { %p762_p8 = pneg %p761_p7 }
  0xe2   : > { %844 = dma.done.wait (%p762_p8), %s499_s28, 2048  }
  0xe3   : > { %846 = vsyncadd (%p762_p8), %s499_s28, 4294965248  ;;  %p12_p9 = scmp.ge.s32.totalorder %s905_s15, 4   ;;  %s1011_s9 = smov %s853_s10 }
  0xe4   : > { %s1012_s10 = smov %s857_s11  ;;  %s1013_s11 = smov %s916_s18 }
  0xe5   : > { %s1014_s12 = smov %s905_s15  ;;  %14 = sbr.rel (!%p12_p9) target bundleno = 3 (0x3), region = 63 }
  0xea   :  { %505 = vsyncpa [#allocation3], 1 }
  0xeb   :  { %507 = vsyncpa [#allocation3 + $0x1], 1 }

</bundles_post_ra>
